<compile_context>
chip_gen: v7x
topology: tpu7x:2x2x1
jax: 0.10.0
libtpu: 0.0.40
codegen_flags: <defaults>
</compile_context>

<pallas_src>
import jax
import jax.numpy as jnp
from jax.experimental import pallas as pl
from jax.experimental.pallas import tpu as pltpu

_LANE = 128
_MAX_BLOCK_ROWS = 4096  # (4096, 128) f32 block = 2 MiB; 4 MiB double-buffered.


def _fill_kernel(inv_s_ref, o_ref):
    # inv_s_ref: SMEM scalar ref of shape (1,) -- precomputed exp(variance*10)
    # o_ref:     VMEM output tile (block_rows, 128) -> lane-dense unmasked vst
    o_ref[...] = jnp.full(o_ref.shape, inv_s_ref[0], dtype=o_ref.dtype)


def variance_network_forward(x, variance):
    """Pallas equivalent of VarianceNetwork.forward.

    Args:
      x:        (N, D) array; only its leading dim is used (matches len(x)).
      variance: scalar float32 parameter.
    Returns:
      (N, 1) float32 array filled with exp(variance * 10.0).
    """
    n = x.shape[0]
    # Hoist the transcendental out of the kernel body: computed once here.
    inv_s = jnp.exp(jnp.asarray(variance, dtype=jnp.float32) * 10.0).reshape((1,))

    # Lane-dense layout: emit a (rows, 128) slab instead of a width-1 column.
    rows = pl.cdiv(n, _LANE)
    if rows <= _MAX_BLOCK_ROWS:
        block_rows = rows  # single block == full array dims (allowed by (8,128) rule)
    else:
        block_rows = _MAX_BLOCK_ROWS  # multiple of 8 -> satisfies (8,128) constraint

    grid = (pl.cdiv(rows, block_rows),)

    padded = pl.pallas_call(
        _fill_kernel,
        out_shape=jax.ShapeDtypeStruct((rows, _LANE), jnp.float32),
        grid_spec=pltpu.PrefetchScalarGridSpec(
            num_scalar_prefetch=0,
            grid=grid,
            in_specs=[
                pl.BlockSpec(memory_space=pltpu.SMEM),  # inv_s scalar, untiled
            ],
            out_specs=pl.BlockSpec((block_rows, _LANE), lambda i: (i, 0)),
        ),
        compiler_params=pltpu.CompilerParams(
            dimension_semantics=("parallel",),
        ),
    )(inv_s)

    # Reshape the lane-dense slab back to the module's (N, 1) output.
    return padded.reshape((rows * _LANE, 1))[:n]


if __name__ == "__main__":
    key = jax.random.PRNGKey(0)
    # Deterministic "config": NeuS-style init_val for the variance parameter.
    init_val = 0.3

    # Example input: batch of 512 points with 4 features (forward only uses len(x)).
    N, D = 512, 4
    x = jax.random.normal(key, (N, D), dtype=jnp.float32)
    variance = jnp.float32(init_val)  # the nn.Parameter, initialized deterministically

    out = variance_network_forward(x, variance)
    out = jax.block_until_ready(out)

    # Reference check against pure-JAX semantics of the PyTorch forward.
    ref = jnp.ones((N, 1), dtype=jnp.float32) * jnp.exp(variance * 10.0)
    assert out.shape == (N, 1), out.shape
    assert jnp.allclose(out, ref, rtol=1e-6, atol=1e-6), (out[0], ref[0])

    print("KERNEL_OK")
</pallas_src>

<mosaic_0001>
module attributes {stable_mosaic.version = 11 : i64} {
  func.func @_fill_kernel(%arg0: i32, %arg1: memref<1xf32, #tpu.memory_space<smem>>, %arg2: memref<4x128xf32, #tpu.memory_space<vmem>>) attributes {dimension_semantics = [#tpu.dimension_semantics<parallel>], iteration_bounds = array<i64: 1>, scalar_prefetch = 0 : i64, scratch_operands = 0 : i64, tpu.core_type = #tpu.core_type<tc>, window_params = [{transform_indices = @transform_0, window_bounds = array<i64: 1>}, {transform_indices = @transform_1, window_bounds = array<i64: 4, 128>}]} {
    %c0 = arith.constant 0 : index
    %0 = memref.load %arg1[%c0] : memref<1xf32, #tpu.memory_space<smem>>
    %1 = vector.broadcast %0 : f32 to vector<4x128xf32>
    %c0_0 = arith.constant 0 : index
    %c0_1 = arith.constant 0 : index
    %2 = vector.load %arg2[%c0_0, %c0_1] : memref<4x128xf32, #tpu.memory_space<vmem>>, vector<4x128xf32>
    tpu.vector_store %arg2[%c0_0, %c0_1], %1 {strides = array<i32>} : memref<4x128xf32, #tpu.memory_space<vmem>>, vector<4x128xf32>,
    return
  }
  func.func @transform_0(%arg0: i32) -> i32 {
    %c0_i32 = arith.constant 0 : i32
    %c0_i32_0 = arith.constant 0 : i32
    return %c0_i32 : i32
  }
  func.func @transform_1(%arg0: i32) -> (i32, i32) {
    %c0_i32 = arith.constant 0 : i32
    %c0_i32_0 = arith.constant 0 : i32
    return %arg0, %c0_i32 : i32, i32
  }
}

</mosaic_0001>

<bundles_post_ra>
// kernel: tpu_custom_call.1
= control target key start
LH: loop header
LB: loop body
LE: loop exit
PB: predicated region body
PF: predicated region fallthrough
CT: control target
= control target key end

     0   :  { %s78_s0 = inlined_call_operand.<no memory space> [shape: f32[1], index: 0, kind: input, shape index: {}]   ;;  %s79_s1 = inlined_call_operand.hbm [shape: f32[4,128], index: 1, kind: output, shape index: {}]  }
   0x1   :  { %v11_v0 = vstv %s78_s0 }
   0x2   :  { %7 = vsyncpa [#allocation4], 0  ;;  %12 = vst [vmem:[#allocation3] sm:$0xf] %v11_v0  ;;  %s52_s8 = smov [#allocation3]  }
   0x3   :  { %s19_s9 = sshll.u32 %s52_s8, 4  ;;  %s20_s9 = int_to_ptr.vmem [resolvable:$true] %s19_s9 }
   0x4   :  { %s28_s10 = scalar_lea.vmem %s20_s9, 64  ;;  %p33_p1 = scmp.lt.s32.totalorder %s20_s9, %s20_s9 }
   0x5   :  { %p29_p0 = scmp.ne.s32.totalorder %s20_s9, %s28_s10  ;;  %p34_p2 = scmp.lt.s32.totalorder %s28_s10, %s28_s10 }
   0x7   :  { %p35_p3 = por %p34_p2, %p33_p1 }
   0x9   :  { %p36_p4 = pnand %p35_p3, %p29_p0 }
   0xb   :  { %39 = shalt.err (!%p36_p4)
}
   0xc   :  { %s40_s13 = scalar_lea.hbm %s79_s1, 64 }
   0xd   :  { %p41_p5 = scmp.ne.s32.totalorder %s79_s1, %s40_s13  ;;  %p44_p6 = scmp.lt.u32.totalorder %s40_s13, %s79_s1 }
   0xf   :  { %p46_p7 = pnand %p44_p6, %p41_p5 }
  0x11   :  { %49 = shalt.err (!%p46_p7)
}
  0x12   :  { %22 = dma.vmem_to_hbm [thread:$0]  %s20_s9, 64, %s79_s1, [#allocation4]  }
  0x13   :  { %50 = dma.done.wait [#allocation4], 64  }
  0x14   :  { %51 = vsyncadd [#allocation4], 4294967232 }
  0x15   :  { %26 = vsyncpa [#allocation4], 1 }

</bundles_post_ra>
